<compile_context>
chip_gen: v6e
topology: v6e:2x2x1
jax: 0.10.0
libtpu: 0.0.40
codegen_flags: <defaults>
</compile_context>

<pallas_src>
import functools

import jax
import jax.numpy as jnp
from jax.experimental import pallas as pl
from jax.experimental.pallas import tpu as pltpu

_LANE = 128


def _rmsnorm_kernel(x_ref, w_ref, o_ref, *, eps: float, x_dtype):
    # x_ref: (tile_rows, dim), w_ref: (1, dim) already in out dtype, o_ref: (tile_rows, dim)
    # Pass 1: per-row mean of squares in f32.
    xf = x_ref[...].astype(jnp.float32)                    # x.float()
    ms = jnp.mean(xf * xf, axis=-1, keepdims=True)         # mean(x^2, -1, keepdim)
    inv = jax.lax.rsqrt(ms + eps)                          # rsqrt(ms + eps)
    # Pass 2: re-read x and apply (avoids holding two full-tile f32 temps).
    normed = (x_ref[...].astype(jnp.float32) * inv).astype(x_dtype)   # .type_as(x)
    # `normed * weight` with PyTorch promotion: weight is already out dtype.
    o_ref[...] = normed.astype(o_ref.dtype) * w_ref[...]


def _round_up(x: int, m: int) -> int:
    return (x + m - 1) // m * m


def _vmem_capacity_bytes() -> int:
    try:
        return int(pltpu.get_tpu_info().vmem_capacity_bytes)
    except Exception:
        pass
    # Generation-aware fallback so v5e/v6e don't silently halve their budget.
    try:
        kind = jax.devices()[0].device_kind.lower()
    except Exception:
        kind = ""
    if "v7" in kind:
        return 64 * 1024 * 1024
    if "v2" in kind or "v3" in kind:
        return 16 * 1024 * 1024
    return 128 * 1024 * 1024          # v4 / v5e / v5p / v6e


def _num_tensorcores() -> int:
    try:
        kind = jax.devices()[0].device_kind.lower()
    except Exception:
        return 1
    # Chips that expose two TensorCores behind one device ("megacore").
    if "v7" in kind or "v4" in kind or "v5p" in kind:
        return 2
    return 1


def rmsnorm_reference(x: jax.Array, weight: jax.Array, eps: float = 1e-6):
    xf = x.astype(jnp.float32)
    normed = (xf * jax.lax.rsqrt(jnp.mean(xf * xf, axis=-1, keepdims=True) + eps)
              ).astype(x.dtype)
    out_dtype = jnp.promote_types(x.dtype, weight.dtype)
    return normed.astype(out_dtype) * weight.astype(out_dtype)


def rmsnorm_pallas(x: jax.Array, weight: jax.Array, eps: float = 1e-6,
                   *, tile_rows: int | None = None) -> jax.Array:
    """RMSNorm over the last axis of `x` using a Pallas TPU kernel."""
    orig_shape = x.shape
    dim = orig_shape[-1]
    assert weight.shape == (dim,)
    out_dtype = jnp.promote_types(x.dtype, weight.dtype)

    # Lane-dense requirement: dim must be a multiple of 128.  Tiny / ragged
    # feature dims would force masked vst.msk stores and waste most of every
    # vreg lane; plain XLA handles them better than this kernel.
    if dim % _LANE != 0:
        return rmsnorm_reference(x, weight, eps)

    rows = 1
    for s in orig_shape[:-1]:
        rows *= s
    if rows == 0:                      # empty leading dims -> degenerate grid
        return jnp.zeros(orig_shape, dtype=out_dtype)

    x2d = x.reshape(rows, dim)
    w2d = weight.astype(out_dtype).reshape(1, dim)   # pre-cast once, DMA'd once

    x_bytes = jnp.dtype(x.dtype).itemsize
    o_bytes = jnp.dtype(out_dtype).itemsize
    # Sublane packing: row tile must be a multiple of 8 (f32) / 16 (bf16) / 32 (int8).
    row_align = max(8, 32 // x_bytes)

    vmem_cap = _vmem_capacity_bytes()
    tile_budget = vmem_cap // 2            # half of VMEM for pipeline buffers
    vmem_limit = int(vmem_cap * 0.75)      # raise the scoped limit (16/32 MiB defaults)
    num_cores = _num_tensorcores()

    if tile_rows is None:
        # Per-row VMEM cost of one grid step: double-buffered input + output
        # tiles plus a single f32-wide intermediate allowance (the kernel body
        # streams x twice instead of keeping two f32 copies live).
        per_row = dim * (2 * x_bytes + 2 * o_bytes + 4)
        tile_rows = tile_budget // per_row
        tile_rows = max(row_align, (tile_rows // row_align) * row_align)
        # Relaxed min-steps: keep >= max(2, 2*cores) steps for DMA overlap /
        # megacore balance, but only if each step still moves >= 2 MiB of input.
        min_steps = max(2, 2 * num_cores)
        cand = _round_up(max(pl.cdiv(rows, min_steps), row_align), row_align)
        if cand * dim * x_bytes >= 2 * 1024 * 1024:
            tile_rows = min(tile_rows, cand)
        # Prefer an even number of grid steps when two TensorCores split it.
        if num_cores > 1:
            steps = pl.cdiv(rows, tile_rows)
            if steps > 1 and steps % 2 == 1:
                tile_rows = max(row_align,
                                _round_up(pl.cdiv(rows, steps + 1), row_align))
    tile_rows = max(row_align, _round_up(int(tile_rows), row_align))
    tile_rows = min(tile_rows, _round_up(rows, row_align))   # never exceed the slab

    # No padding / slicing: non-dividing grid, the last partial block's OOB rows
    # only affect their own per-row reduction and their writes are dropped.
    grid = (pl.cdiv(rows, tile_rows),)

    cost = pl.CostEstimate(
        flops=4 * rows * dim,
        transcendentals=rows,
        bytes_accessed=rows * dim * (x_bytes + o_bytes) + dim * o_bytes,
    )

    out2d = pl.pallas_call(
        functools.partial(_rmsnorm_kernel, eps=eps, x_dtype=x.dtype),
        out_shape=jax.ShapeDtypeStruct((rows, dim), out_dtype),
        grid_spec=pltpu.PrefetchScalarGridSpec(
            num_scalar_prefetch=0,
            grid=grid,
            in_specs=[
                pl.BlockSpec((tile_rows, dim), lambda i: (i, 0)),
                pl.BlockSpec((1, dim), lambda i: (0, 0)),
            ],
            out_specs=pl.BlockSpec((tile_rows, dim), lambda i: (i, 0)),
        ),
        compiler_params=pltpu.CompilerParams(
            dimension_semantics=("parallel",),
            vmem_limit_bytes=vmem_limit,
        ),
        cost_estimate=cost,
    )(x2d, w2d)

    return out2d.reshape(orig_shape)


if __name__ == "__main__":
    key = jax.random.PRNGKey(0)
    k0, k1, k2 = jax.random.split(key, 3)

    # 1) Small lane-dense shape, f32 activations and f32 (ones) weight.
    batch, seq, dim = 2, 8, 128
    x = jax.random.normal(k0, (batch, seq, dim), dtype=jnp.float32)
    weight = jnp.ones((dim,), dtype=jnp.float32)          # nn.Parameter(torch.ones(dim))
    out = jax.block_until_ready(rmsnorm_pallas(x, weight, eps=1e-6))
    ref = rmsnorm_reference(x, weight, eps=1e-6)
    assert out.shape == x.shape and out.dtype == ref.dtype
    assert jnp.allclose(out, ref, atol=1e-5, rtol=1e-5)

    # 2) bf16 activations, f32 weight, row count not a sublane multiple
    #    (exercises the partial last block + PyTorch-style promotion to f32).
    xb = jax.random.normal(k1, (3, 5, dim), dtype=jnp.bfloat16)
    wb = (1.0 + 0.1 * jax.random.normal(key, (dim,))).astype(jnp.float32)
    outb = jax.block_until_ready(rmsnorm_pallas(xb, wb, eps=1e-6))
    refb = rmsnorm_reference(xb, wb, eps=1e-6)
    assert outb.shape == xb.shape and outb.dtype == refb.dtype == jnp.float32
    assert jnp.allclose(outb, refb, atol=1e-2, rtol=1e-2)

    # 3) Forced small tile so the grid has several steps and a ragged tail
    #    (rows = 20, tile_rows = 8 -> grid of 3, last block partial).
    xc = jax.random.normal(k2, (5, 4, dim), dtype=jnp.float32)
    wc = (1.0 + 0.05 * jax.random.normal(k2, (dim,))).astype(jnp.float32)
    outc = jax.block_until_ready(rmsnorm_pallas(xc, wc, eps=1e-6, tile_rows=8))
    refc = rmsnorm_reference(xc, wc, eps=1e-6)
    assert outc.shape == xc.shape and outc.dtype == refc.dtype
    assert jnp.allclose(outc, refc, atol=1e-5, rtol=1e-5)

    print("KERNEL_OK")
</pallas_src>

<mosaic_0001>
module attributes {stable_mosaic.version = 11 : i64} {
  func.func @_rmsnorm_kernel(%arg0: i32, %arg1: memref<16x128xf32, #tpu.memory_space<vmem>>, %arg2: memref<1x128xf32, #tpu.memory_space<vmem>>, %arg3: memref<16x128xf32, #tpu.memory_space<vmem>>) attributes {dimension_semantics = [#tpu.dimension_semantics<parallel>], iteration_bounds = array<i64: 1>, scalar_prefetch = 0 : i64, scratch_operands = 0 : i64, tpu.core_type = #tpu.core_type<tc>, window_params = [{transform_indices = @transform_0, window_bounds = array<i64: 16, 128>}, {pipeline_mode = #tpu.pipeline_mode<synchronous>, transform_indices = @transform_1, window_bounds = array<i64: 1, 128>}, {transform_indices = @transform_2, window_bounds = array<i64: 16, 128>}]} {
    %c0 = arith.constant 0 : index
    %c0_0 = arith.constant 0 : index
    %0 = vector.load %arg1[%c0, %c0_0] : memref<16x128xf32, #tpu.memory_space<vmem>>, vector<16x128xf32>
    %1 = arith.mulf %0, %0 : vector<16x128xf32>
    %cst = arith.constant dense<0.000000e+00> : vector<16xf32>
    %2 = vector.multi_reduction <add>, %1, %cst [1] : vector<16x128xf32> to vector<16xf32>
    %3 = vector.shape_cast %2 : vector<16xf32> to vector<16x1xf32>
    %cst_1 = arith.constant 1.280000e+02 : f32
    %4 = vector.broadcast %cst_1 : f32 to vector<16x1xf32>
    %5 = arith.divf %3, %4 : vector<16x1xf32>
    %cst_2 = arith.constant 9.99999997E-7 : f32
    %6 = vector.broadcast %cst_2 : f32 to vector<16x1xf32>
    %7 = arith.addf %5, %6 : vector<16x1xf32>
    %8 = math.rsqrt %7 : vector<16x1xf32>
    %c0_3 = arith.constant 0 : index
    %c0_4 = arith.constant 0 : index
    %9 = vector.load %arg1[%c0_3, %c0_4] : memref<16x128xf32, #tpu.memory_space<vmem>>, vector<16x128xf32>
    %10 = vector.broadcast %8 : vector<16x1xf32> to vector<16x128xf32>
    %11 = arith.mulf %9, %10 : vector<16x128xf32>
    %c0_5 = arith.constant 0 : index
    %c0_6 = arith.constant 0 : index
    %12 = vector.load %arg2[%c0_5, %c0_6] : memref<1x128xf32, #tpu.memory_space<vmem>>, vector<1x128xf32>
    %13 = vector.broadcast %12 : vector<1x128xf32> to vector<16x128xf32>
    %14 = arith.mulf %11, %13 : vector<16x128xf32>
    %c0_7 = arith.constant 0 : index
    %c0_8 = arith.constant 0 : index
    %15 = vector.load %arg3[%c0_7, %c0_8] : memref<16x128xf32, #tpu.memory_space<vmem>>, vector<16x128xf32>
    tpu.vector_store %arg3[%c0_7, %c0_8], %14 {strides = array<i32>} : memref<16x128xf32, #tpu.memory_space<vmem>>, vector<16x128xf32>,
    return
  }
  func.func @transform_0(%arg0: i32) -> (i32, i32) {
    %c0_i32 = arith.constant 0 : i32
    %c0_i32_0 = arith.constant 0 : i32
    return %arg0, %c0_i32 : i32, i32
  }
  func.func @transform_1(%arg0: i32) -> (i32, i32) {
    %c0_i32 = arith.constant 0 : i32
    %c0_i32_0 = arith.constant 0 : i32
    %c0_i32_1 = arith.constant 0 : i32
    return %c0_i32, %c0_i32_0 : i32, i32
  }
  func.func @transform_2(%arg0: i32) -> (i32, i32) {
    %c0_i32 = arith.constant 0 : i32
    %c0_i32_0 = arith.constant 0 : i32
    return %arg0, %c0_i32 : i32, i32
  }
}

</mosaic_0001>

<bundles_post_ra>
// kernel: tpu_custom_call.1
= control target key start
LH: loop header
LB: loop body
LE: loop exit
PB: predicated region body
PF: predicated region fallthrough
CT: control target
= control target key end

     0   :  { %7 = vsyncpa [#allocation3], 0  ;;  %s158_s0 = inlined_call_operand.hbm [shape: f32[16,128], index: 0, kind: input, shape index: {}]   ;;  %s159_s1 = inlined_call_operand.vmem [shape: f32[1,128], index: 1, kind: input, shape index: {}]   ;;  %s160_s2 = inlined_call_operand.hbm [shape: f32[16,128], index: 2, kind: output, shape index: {}]  }
   0x1   :  { %8 = vsyncpa [#allocation4], 0  ;;  %s124_s9 = smov [#allocation2]  }
   0x2   :  { %s14_s10 = sshll.u32 %s124_s9, 4  ;;  %s15_s10 = int_to_ptr.vmem [resolvable:$true] %s14_s10 }
   0x3   :  { %s88_s11 = scalar_lea.vmem %s15_s10, 256  ;;  %p93_p1 = scmp.lt.s32.totalorder %s15_s10, %s15_s10 }
   0x4   :  { %p89_p0 = scmp.ne.s32.totalorder %s15_s10, %s88_s11  ;;  %p94_p2 = scmp.lt.s32.totalorder %s88_s11, %s88_s11 }
   0x6   :  { %p95_p3 = por %p94_p2, %p93_p1 }
   0x8   :  { %p96_p4 = pnand %p95_p3, %p89_p0 }
   0xa   :  { %99 = shalt.err (!%p96_p4)
}
   0xb   :  { %s125_s12 = smov 128   ;;  %s126_s13 = smov 8  }
   0xc   :  { %20 = dma.hbm_to_vmem [thread:$0]  %s158_s0, 256, %s15_s10, [#allocation3], %s125_s12, %s125_s12, %s126_s13  }
   0xd   :  { %120 = dma.done.wait [#allocation3], 256  }
   0xe   :  { %121 = vsyncadd [#allocation3], 4294967040  ;;  %v26_v0 = vld [vmem:[#allocation2] sm:$0xff]  ;;  %v27_v1 = vld [vmem:[#allocation2 + $0x8] sm:$0xff]  ;;  %s127_s0 = smov [#allocation5]  }
   0xf   :  { %v28_v2 = vmul.f32 %v26_v0, %v26_v0  ;;  %v29_v3 = vmul.f32 %v27_v1, %v27_v1  ;;  %v71_v11 = vld [vmem:[%s159_s1] ss:$0 sm:$0xff]  ;;  %s59_s18 = sshll.u32 %s127_s0, 4  ;;  %s60_s18 = int_to_ptr.vmem [resolvable:$true] %s59_s18 }
  0x10   :  { %s100_s19 = scalar_lea.vmem %s60_s18, 256  ;;  %p105_p6 = scmp.lt.s32.totalorder %s60_s18, %s60_s18 }
  0x11   :  { %30 = vadd.xlane.f32.xlu0 %v28_v2  ;;  %p101_p5 = scmp.ne.s32.totalorder %s60_s18, %s100_s19  ;;  %p106_p7 = scmp.lt.s32.totalorder %s100_s19, %s100_s19 }
  0x13   :  { %p107_p8 = por %p106_p7, %p105_p6 }
  0x15   :  { %32 = vadd.xlane.f32.xlu0 %v29_v3  ;;  %p108_p9 = pnand %p107_p8, %p101_p5 }
  0x9a   :  { %v31_v4 = vpop.xlane.xlu0 %30 }
  0x9b   :  { %v35_v5 = vmul.f32 0.0078125, %v31_v4 }
  0x9d   :  { %v37_v6 = vadd.f32 1e-06, %v35_v5 }
  0x9e   :  { %v33_v7 = vpop.xlane.xlu0 %32 }
  0x9f   :  { %76 = vrsqrt.f32 %v37_v6  ;;  %v36_v8 = vmul.f32 0.0078125, %v33_v7 }
  0xa1   :  { %v38_v9 = vadd.f32 1e-06, %v36_v8 }
  0xa3   :  { %78 = vrsqrt.f32 %v38_v9 }
  0xac   :  { %v77_v10 = vpop.eup %76 }
  0xad   :  { %v41_v12 = vmul.f32 %v77_v10, %v26_v0 }
  0xaf   :  { %v50_v13 = vmul.f32 %v71_v11, %v41_v12 }
  0xb0   :  { %v79_v14 = vpop.eup %78 }
  0xb1   :  { %v42_v15 = vmul.f32 %v79_v14, %v27_v1  ;;  %52 = vst [vmem:[#allocation5] sm:$0xff] %v50_v13 }
  0xb3   :  { %v51_v16 = vmul.f32 %v71_v11, %v42_v15 }
  0xb5   :  { %53 = vst [vmem:[#allocation5 + $0x8] sm:$0xff] %v51_v16 }
  0xb6   :  { %111 = shalt.err (!%p108_p9)
}
  0xb7   :  { %65 = dma.vmem_to_hbm [thread:$0]  %s60_s18, 256, %s160_s2, [#allocation4], %s125_s12, %s125_s12, %s126_s13  }
  0xb8   :  { %122 = dma.done.wait [#allocation4], 256  }
  0xb9   :  { %123 = vsyncadd [#allocation4], 4294967040 }
  0xba   :  { %69 = vsyncpa [#allocation3], 1 }
  0xbb   :  { %70 = vsyncpa [#allocation4], 1 }

</bundles_post_ra>
